<compile_context>
chip_gen: v5e
topology: v5e:2x2
jax: 0.10.0
libtpu: 0.0.40
codegen_flags: <defaults>
</compile_context>

<pallas_src>
import functools

import jax
import jax.numpy as jnp
from jax import lax
from jax.experimental import pallas as pl
from jax.experimental.pallas import tpu as pltpu


def mlp2_kernel(x_ref, w1_ref, b1_ref, w2_ref, b2_ref, o_ref):
    # x_ref : (TN, F)  native (nodes, features) tile -- no wrapper transpose.
    # w1_ref: (H, F)   lin1 weight, native PyTorch (out, in) layout.
    # b1_ref: (H, 1)   f32
    # w2_ref: (C, H)   lin2 weight, native PyTorch (out, in) layout.
    # b2_ref: (C, 1)   f32
    # o_ref : (C, TN)  lane-dense output tile (nodes on lanes).
    #
    # h = W1 @ x^T : contract the feature axis of BOTH operands, so the
    # (TN,F) -> (F,TN) flip happens in-kernel (XLU slot, free in this
    # DMA-bound kernel) instead of as a separate XLA transpose through HBM.
    h = lax.dot_general(
        w1_ref[...], x_ref[...],
        dimension_numbers=(((1,), (1,)), ((), ())),
        preferred_element_type=jnp.float32)                    # (H, TN) f32
    h = jnp.maximum(h + b1_ref[...], 0.0)                      # bias + ReLU, f32
    # TODO(synk): Dropout(0.25) is identity here (inference / eval mode);
    # training-mode dropout would use pltpu.prng_seed / pltpu.prng_random_bits
    # with 1/(1-p) scaling.
    w2 = w2_ref[...].astype(jnp.float32)                       # tiny (C, H)
    out = jnp.dot(w2, h, preferred_element_type=jnp.float32)   # (C, TN) f32
    o_ref[...] = (out + b2_ref[...]).astype(o_ref.dtype)


def _device_kind():
    try:
        return jax.devices()[0].device_kind.lower()
    except Exception:
        return ""


def _lane_tile_cap(kind):
    # Generation-tuned lane-tile caps: bigger tiles amortize the ~0.35us
    # per-grid-step pipeline overhead; faster HBM needs bigger tiles.
    if "v5" in kind:
        return 16_384
    if "v7" in kind:
        return 65_536
    return 32_768  # v6e and unknown/default


def _choose_tile_n(n, kind):
    cap = _lane_tile_cap(kind)
    n_aligned = pl.cdiv(n, 128) * 128
    num_tiles = pl.cdiv(n_aligned, cap)
    # v7x has 2 TensorCores/chip: prefer an even number (>= 2) of grid steps
    # so dimension_semantics=("parallel",) can actually shard across them.
    if "v7" in kind and n_aligned >= 2048:
        num_tiles = max(num_tiles, 2)
        num_tiles += num_tiles % 2
    # Balanced, lane-aligned tiles (avoids a mostly-zero-padded last tile).
    return pl.cdiv(pl.cdiv(n_aligned, num_tiles), 128) * 128


def _mlp_2layer_pallas(x, w1, b1, w2, b2, *, tile_n, use_bf16_inputs, out_dtype):
    N, F = x.shape
    H = w1.shape[0]
    C = w2.shape[0]
    in_dtype = jnp.bfloat16 if use_bf16_inputs else jnp.float32

    if tile_n is None:
        tile_n = _choose_tile_n(N, _device_kind())
    n_pad = pl.cdiv(N, tile_n) * tile_n

    xk = jnp.asarray(x, in_dtype)                            # (N, F), native layout
    if n_pad != N:
        xk = jnp.pad(xk, ((0, n_pad - N), (0, 0)))           # cheap row pad, fuses w/ cast

    w1k = jnp.asarray(w1, in_dtype)                          # (H, F)
    w2k = jnp.asarray(w2, in_dtype)                          # (C, H)
    b1k = jnp.asarray(b1, jnp.float32).reshape(H, 1)         # broadcast over lanes
    b2k = jnp.asarray(b2, jnp.float32).reshape(C, 1)

    in_isz = jnp.dtype(in_dtype).itemsize
    out_isz = jnp.dtype(out_dtype).itemsize

    # VMEM budget: x/out tiles double-buffered + f32 intermediate h + weights.
    working_set = (2 * tile_n * F * in_isz
                   + 2 * tile_n * C * out_isz
                   + tile_n * H * 4
                   + (H * F + C * H) * in_isz + (H + C) * 4)
    vmem_limit = int(min(max(2 * working_set + (4 << 20), 32 << 20), 64 << 20))

    cost = pl.CostEstimate(
        flops=2 * N * (F * H + H * C),
        transcendentals=0,
        bytes_accessed=(N * F * in_isz + N * C * out_isz
                        + (H * F + C * H) * in_isz + (H + C) * 4),
    )

    grid = (n_pad // tile_n,)
    out_t = pl.pallas_call(
        mlp2_kernel,
        out_shape=jax.ShapeDtypeStruct((C, n_pad), out_dtype),
        grid_spec=pltpu.PrefetchScalarGridSpec(
            num_scalar_prefetch=0,
            grid=grid,
            in_specs=[
                pl.BlockSpec((tile_n, F), lambda i: (i, 0)),  # x tile, native layout
                pl.BlockSpec((H, F), lambda i: (0, 0)),       # W1 (resident)
                pl.BlockSpec((H, 1), lambda i: (0, 0)),       # b1
                pl.BlockSpec((C, H), lambda i: (0, 0)),       # W2 (resident)
                pl.BlockSpec((C, 1), lambda i: (0, 0)),       # b2
            ],
            out_specs=pl.BlockSpec((C, tile_n), lambda i: (0, i)),
        ),
        compiler_params=pltpu.CompilerParams(
            dimension_semantics=("parallel",),
            vmem_limit_bytes=vmem_limit,
        ),
        cost_estimate=cost,
    )(xk, w1k, b1k, w2k, b2k)

    # Padded lane columns hold bias-only garbage; they never escape the slice.
    return out_t[:, :N]


def mlp_2layer_forward(x, edge_index, w1, b1, w2, b2, *,
                       tile_n=None, use_bf16_inputs=True,
                       out_dtype=jnp.float32, min_pallas_n=8192,
                       transpose_output=True):
    """out = Linear2(Dropout(ReLU(Linear1(x)))), Dropout in eval mode (identity).

    x: (N, F); edge_index accepted but unused (as in the PyTorch forward).
    w1: (H, F), b1: (H,), w2: (C, H), b2: (C,)  -- PyTorch nn.Linear layout.

    For N < min_pallas_n the pipeline is launch-dominated and XLA's fused
    matmul wins, so a plain jnp expression is used (set min_pallas_n=0 to
    force the Pallas path).  Returns (N, C) when transpose_output=True
    (PyTorch-matching); callers that can consume the kernel-native lane-dense
    (C, N) layout should pass transpose_output=False to skip one full HBM
    round trip of the output.
    """
    del edge_index
    N = x.shape[0]
    if N < min_pallas_n:
        h = jnp.maximum(x @ w1.T + b1, 0.0)
        out = (h @ w2.T + b2).astype(out_dtype)
        return out if transpose_output else out.T
    out_t = _mlp_2layer_pallas(x, w1, b1, w2, b2, tile_n=tile_n,
                               use_bf16_inputs=use_bf16_inputs,
                               out_dtype=out_dtype)
    return out_t.T if transpose_output else out_t


def mlp_2layer_reference(x, w1, b1, w2, b2):
    h = jnp.maximum(x @ w1.T + b1, 0.0)
    return h @ w2.T + b2


if __name__ == "__main__":
    # Shapes consistent with the module: num_features=16, hidden_channels=32,
    # num_classes=8, N=128 nodes.
    N, F, H, C = 128, 16, 32, 8

    key = jax.random.PRNGKey(0)
    kx, kw1, kb1, kw2, kb2 = jax.random.split(key, 5)

    x = jax.random.normal(kx, (N, F), dtype=jnp.float32)
    # Deterministic synthetic parameters (nn.Linear shapes: (out, in) / (out,))
    w1 = jax.random.normal(kw1, (H, F), dtype=jnp.float32) * 0.1
    b1 = jax.random.normal(kb1, (H,), dtype=jnp.float32) * 0.1
    w2 = jax.random.normal(kw2, (C, H), dtype=jnp.float32) * 0.1
    b2 = jax.random.normal(kb2, (C,), dtype=jnp.float32) * 0.1

    # edge_index is unused by the MLP forward; build a dummy one anyway.
    edge_index = jnp.zeros((2, 4), dtype=jnp.int32)

    ref = mlp_2layer_reference(x, w1, b1, w2, b2)

    # 1) Pallas path, f32 inputs -> tight agreement with the reference.
    fwd_f32 = jax.jit(functools.partial(
        mlp_2layer_forward, use_bf16_inputs=False, min_pallas_n=0))
    out_f32 = jax.block_until_ready(fwd_f32(x, edge_index, w1, b1, w2, b2))
    assert out_f32.shape == (N, C)
    assert jnp.allclose(out_f32, ref, atol=1e-5, rtol=1e-5), "f32 mismatch"

    # 2) Pallas path, default bf16 inputs (f32 MXU accumulation).
    fwd_bf16 = jax.jit(functools.partial(mlp_2layer_forward, min_pallas_n=0))
    out_bf16 = jax.block_until_ready(fwd_bf16(x, edge_index, w1, b1, w2, b2))
    assert out_bf16.shape == (N, C)
    assert jnp.allclose(out_bf16, ref, atol=3e-2, rtol=3e-2), "bf16 mismatch"

    # 3) Non-tile-multiple N + explicit small tile -> multi-step grid + padding.
    N2 = 5 * 128 + 37
    x2 = jax.random.normal(kx, (N2, F), dtype=jnp.float32)
    out2 = jax.block_until_ready(
        mlp_2layer_forward(x2, edge_index, w1, b1, w2, b2,
                           use_bf16_inputs=False, min_pallas_n=0, tile_n=128))
    ref2 = mlp_2layer_reference(x2, w1, b1, w2, b2)
    assert out2.shape == (N2, C)
    assert jnp.allclose(out2, ref2, atol=1e-5, rtol=1e-5), "padded-N mismatch"

    # 4) Small-N dispatch path (XLA fused matmul, no Pallas launch).
    out_small = jax.block_until_ready(
        mlp_2layer_forward(x, edge_index, w1, b1, w2, b2))
    assert out_small.shape == (N, C)
    assert jnp.allclose(out_small, ref, atol=1e-5, rtol=1e-5), "dispatch mismatch"

    print("KERNEL_OK")
</pallas_src>

<mosaic_0001>
module attributes {stable_mosaic.version = 11 : i64} {
  func.func @mlp2_kernel(%arg0: i32, %arg1: memref<128x16xf32, #tpu.memory_space<vmem>>, %arg2: memref<32x16xf32, #tpu.memory_space<vmem>>, %arg3: memref<32x1xf32, #tpu.memory_space<vmem>>, %arg4: memref<8x32xf32, #tpu.memory_space<vmem>>, %arg5: memref<8x1xf32, #tpu.memory_space<vmem>>, %arg6: memref<8x128xf32, #tpu.memory_space<vmem>>) attributes {dimension_semantics = [#tpu.dimension_semantics<parallel>], iteration_bounds = array<i64: 1>, scalar_prefetch = 0 : i64, scratch_operands = 0 : i64, tpu.core_type = #tpu.core_type<tc>, window_params = [{transform_indices = @transform_0, window_bounds = array<i64: 128, 16>}, {pipeline_mode = #tpu.pipeline_mode<synchronous>, transform_indices = @transform_1, window_bounds = array<i64: 32, 16>}, {pipeline_mode = #tpu.pipeline_mode<synchronous>, transform_indices = @transform_2, window_bounds = array<i64: 32, 1>}, {pipeline_mode = #tpu.pipeline_mode<synchronous>, transform_indices = @transform_3, window_bounds = array<i64: 8, 32>}, {pipeline_mode = #tpu.pipeline_mode<synchronous>, transform_indices = @transform_4, window_bounds = array<i64: 8, 1>}, {transform_indices = @transform_5, window_bounds = array<i64: 8, 128>}]} {
    %c0 = arith.constant 0 : index
    %c0_0 = arith.constant 0 : index
    %0 = vector.load %arg2[%c0, %c0_0] : memref<32x16xf32, #tpu.memory_space<vmem>>, vector<32x16xf32>
    %c0_1 = arith.constant 0 : index
    %c0_2 = arith.constant 0 : index
    %1 = vector.load %arg1[%c0_1, %c0_2] : memref<128x16xf32, #tpu.memory_space<vmem>>, vector<128x16xf32>
    %cst = arith.constant dense<0.000000e+00> : vector<32x128xf32>
    %2 = tpu.matmul %0, %1, %cst {dimension_numbers = #tpu.dot_dimension_numbers<[1], [1], [0], [0], [0, 0, 1, 0], [], []>} : vector<32x16xf32>, vector<128x16xf32>, vector<32x128xf32> -> vector<32x128xf32>
    %c0_3 = arith.constant 0 : index
    %c0_4 = arith.constant 0 : index
    %3 = vector.load %arg3[%c0_3, %c0_4] : memref<32x1xf32, #tpu.memory_space<vmem>>, vector<32x1xf32>
    %4 = vector.broadcast %3 : vector<32x1xf32> to vector<32x128xf32>
    %5 = arith.addf %2, %4 : vector<32x128xf32>
    %cst_5 = arith.constant 0.000000e+00 : f32
    %6 = vector.broadcast %cst_5 : f32 to vector<32x128xf32>
    %7 = arith.maximumf %5, %6 : vector<32x128xf32>
    %c0_6 = arith.constant 0 : index
    %c0_7 = arith.constant 0 : index
    %8 = vector.load %arg4[%c0_6, %c0_7] : memref<8x32xf32, #tpu.memory_space<vmem>>, vector<8x32xf32>
    %cst_8 = arith.constant dense<0.000000e+00> : vector<8x128xf32>
    %9 = tpu.matmul %8, %7, %cst_8 {dimension_numbers = #tpu.dot_dimension_numbers<[1], [0], [0], [1], [0, 0, 1, 1], [], []>} : vector<8x32xf32>, vector<32x128xf32>, vector<8x128xf32> -> vector<8x128xf32>
    %c0_9 = arith.constant 0 : index
    %c0_10 = arith.constant 0 : index
    %10 = vector.load %arg5[%c0_9, %c0_10] : memref<8x1xf32, #tpu.memory_space<vmem>>, vector<8x1xf32>
    %11 = vector.broadcast %10 : vector<8x1xf32> to vector<8x128xf32>
    %12 = arith.addf %9, %11 : vector<8x128xf32>
    %c0_11 = arith.constant 0 : index
    %c0_12 = arith.constant 0 : index
    %13 = vector.load %arg6[%c0_11, %c0_12] : memref<8x128xf32, #tpu.memory_space<vmem>>, vector<8x128xf32>
    tpu.vector_store %arg6[%c0_11, %c0_12], %12 {strides = array<i32>} : memref<8x128xf32, #tpu.memory_space<vmem>>, vector<8x128xf32>,
    return
  }
  func.func @transform_0(%arg0: i32) -> (i32, i32) {
    %c0_i32 = arith.constant 0 : i32
    %c0_i32_0 = arith.constant 0 : i32
    return %arg0, %c0_i32 : i32, i32
  }
  func.func @transform_1(%arg0: i32) -> (i32, i32) {
    %c0_i32 = arith.constant 0 : i32
    %c0_i32_0 = arith.constant 0 : i32
    %c0_i32_1 = arith.constant 0 : i32
    return %c0_i32, %c0_i32_0 : i32, i32
  }
  func.func @transform_2(%arg0: i32) -> (i32, i32) {
    %c0_i32 = arith.constant 0 : i32
    %c0_i32_0 = arith.constant 0 : i32
    %c0_i32_1 = arith.constant 0 : i32
    return %c0_i32, %c0_i32_0 : i32, i32
  }
  func.func @transform_3(%arg0: i32) -> (i32, i32) {
    %c0_i32 = arith.constant 0 : i32
    %c0_i32_0 = arith.constant 0 : i32
    %c0_i32_1 = arith.constant 0 : i32
    return %c0_i32, %c0_i32_0 : i32, i32
  }
  func.func @transform_4(%arg0: i32) -> (i32, i32) {
    %c0_i32 = arith.constant 0 : i32
    %c0_i32_0 = arith.constant 0 : i32
    %c0_i32_1 = arith.constant 0 : i32
    return %c0_i32, %c0_i32_0 : i32, i32
  }
  func.func @transform_5(%arg0: i32) -> (i32, i32) {
    %c0_i32 = arith.constant 0 : i32
    %c0_i32_0 = arith.constant 0 : i32
    return %c0_i32, %arg0 : i32, i32
  }
}

</mosaic_0001>

<bundles_post_ra>
// kernel: mlp_2layer_forward.1
= control target key start
LH: loop header
LB: loop body
LE: loop exit
PB: predicated region body
PF: predicated region fallthrough
CT: control target
= control target key end

     0   :  { %vm65_vm0 = vcmask 130048   ;;  %s456_s0 = inlined_call_operand.vmem [shape: f32[128,16], index: 0, kind: input, shape index: {}]   ;;  %s457_s1 = inlined_call_operand.vmem [shape: f32[32,16], index: 1, kind: input, shape index: {}]   ;;  %s458_s2 = inlined_call_operand.vmem [shape: f32[32,1], index: 2, kind: input, shape index: {}]   ;;  %s459_s3 = inlined_call_operand.vmem [shape: f32[8,32], index: 3, kind: input, shape index: {}]   ;;  %s460_s4 = inlined_call_operand.vmem [shape: f32[8,1], index: 4, kind: input, shape index: {}]   ;;  %s461_s5 = inlined_call_operand.hbm [shape: f32[8,128], index: 5, kind: output, shape index: {}]  }
   0x1   :  { %v40_v0 = vld [vmem:[%s456_s0 + $0x78] sm:$0xff]  ;;  %v39_v1 = vld [vmem:[%s456_s0 + $0x70] sm:$0xff] }
   0x2   :  { %229 = vmatpush.xpose.msk.msra.mxu3 %vm65_vm0, %v40_v0  ;;  %228 = vmatpush.xpose.msk.msra.mxu2 %vm65_vm0, %v40_v0 }
   0x3   :  { %207 = vmatpush.xpose.msk.msra.mxu0 %vm65_vm0, %v40_v0 }
   0x4   :  { %10 = vsyncpa [#allocation3], 0  ;;  %v38_v2 = vld [vmem:[%s456_s0 + $0x68] sm:$0xff]  ;;  %v37_v3 = vld [vmem:[%s456_s0 + $0x60] sm:$0xff]  ;;  %v291_v10 = vmov 0   ;;  %vm166_vm1 = vcmask 261120  }
   0x5   :  { %v36_v4 = vld [vmem:[%s456_s0 + $0x58] sm:$0xff]  ;;  %v35_v5 = vld [vmem:[%s456_s0 + $0x50] sm:$0xff]  ;;  %v34_v6 = vld [vmem:[%s456_s0 + $0x48] sm:$0xff]  ;;  %262 = vset.pattern.permute.xlu0 %v291_v10  ;;  %263 = vset.pattern.permute.xlu1 %v291_v10  ;;  %s292_s16 = smov [#allocation2]   ;;  %s198_s20 = sshll.u32 %s461_s5, 4  ;;  %s199_s20 = int_to_ptr.hbm [resolvable:$true] %s198_s20 }
   0x6   :  { %231 = vmatpush.xpose.msk.msra.mxu3 %vm65_vm0, %v39_v1  ;;  %230 = vmatpush.xpose.msk.msra.mxu2 %vm65_vm0, %v39_v1  ;;  %v33_v7 = vld [vmem:[%s456_s0 + $0x40] sm:$0xff]  ;;  %v32_v8 = vld [vmem:[%s456_s0 + $0x38] sm:$0xff]  ;;  %v31_v9 = vld [vmem:[%s456_s0 + $0x30] sm:$0xff]  ;;  %s196_s17 = sshll.u32 %s292_s16, 4  ;;  %s197_s17 = int_to_ptr.vmem [resolvable:$true] %s196_s17 }
   0x7   :  { %208 = vmatpush.xpose.msk.msra.mxu0 %vm65_vm0, %v39_v1  ;;  %264 = vset.pattern.permute.xlu2 %v291_v10  ;;  %v30_v11 = vld [vmem:[%s456_s0 + $0x28] sm:$0xff]  ;;  %v44_v12 = vld [vmem:[%s458_s2 + $0x18] sm:$0xff]  ;;  %v29_v14 = vld [vmem:[%s456_s0 + $0x20] sm:$0xff] }
   0x8   :  { %v42_v13 = vld [vmem:[%s458_s2 + $0x8] sm:$0xff]  ;;  %62 = vperm.xlu0 %262, %v44_v12   ;;  %v28_v15 = vld [vmem:[%s456_s0 + $0x18] sm:$0xff]  ;;  %v43_v16 = vld [vmem:[%s458_s2 + $0x10] sm:$0xff] }
   0x9   :  { %52 = vperm.xlu1 %263, %v42_v13   ;;  %v41_v17 = vld [vmem:[%s458_s2] sm:$0xff]  ;;  %v27_v18 = vld [vmem:[%s456_s0 + $0x10] sm:$0xff]  ;;  %v26_v19 = vld [vmem:[%s456_s0 + $0x8] sm:$0xff] }
   0xa   :  { %233 = vmatpush.xpose.msk.msra.mxu3 %vm65_vm0, %v38_v2  ;;  %232 = vmatpush.xpose.msk.msra.mxu2 %vm65_vm0, %v38_v2  ;;  %v25_v20 = vld [vmem:[%s456_s0] sm:$0xff]  ;;  %v23_v21 = vld [vmem:[%s457_s1 + $0x10] sm:$0xff]  ;;  %v22_v22 = vld [vmem:[%s457_s1 + $0x8] sm:$0xff] }
   0xb   :  { %209 = vmatpush.xpose.msk.msra.mxu0 %vm65_vm0, %v38_v2  ;;  %v21_v23 = vld [vmem:[%s457_s1] sm:$0xff]  ;;  %v24_v24 = vld [vmem:[%s457_s1 + $0x18] sm:$0xff] }
   0xc   :  { %v160_v25 = vld [vmem:[%s460_s4] sm:$0xff] }
   0xd   :  { %163 = vperm.xlu2 %264, %v160_v25   ;;  %v159_v42 = vld [vmem:[%s459_s3] sm:$0xff] }
   0xe   :  { %235 = vmatpush.xpose.msk.msra.mxu3 %vm65_vm0, %v37_v3  ;;  %234 = vmatpush.xpose.msk.msra.mxu2 %vm65_vm0, %v37_v3 }
   0xf   :  { %210 = vmatpush.xpose.msk.msra.mxu0 %vm65_vm0, %v37_v3 }
  0x10   :  { %57 = vperm.xlu0 %262, %v43_v16  }
  0x11   :  { %47 = vperm.xlu1 %263, %v41_v17  }
  0x12   :  { %237 = vmatpush.xpose.msk.msra.mxu3 %vm65_vm0, %v36_v4  ;;  %236 = vmatpush.xpose.msk.msra.mxu2 %vm65_vm0, %v36_v4 }
  0x13   :  { %211 = vmatpush.xpose.msk.msra.mxu0 %vm65_vm0, %v36_v4 }
  0x16   :  { %239 = vmatpush.xpose.msk.msra.mxu3 %vm65_vm0, %v35_v5  ;;  %238 = vmatpush.xpose.msk.msra.mxu2 %vm65_vm0, %v35_v5 }
  0x17   :  { %212 = vmatpush.xpose.msk.msra.mxu0 %vm65_vm0, %v35_v5 }
  0x1a   :  { %241 = vmatpush.xpose.msk.msra.mxu3 %vm65_vm0, %v34_v6  ;;  %240 = vmatpush.xpose.msk.msra.mxu2 %vm65_vm0, %v34_v6 }
  0x1b   :  { %213 = vmatpush.xpose.msk.msra.mxu0 %vm65_vm0, %v34_v6 }
  0x1e   :  { %243 = vmatpush.xpose.msk.msra.mxu3 %vm65_vm0, %v33_v7  ;;  %242 = vmatpush.xpose.msk.msra.mxu2 %vm65_vm0, %v33_v7 }
  0x1f   :  { %214 = vmatpush.xpose.msk.msra.mxu0 %vm65_vm0, %v33_v7 }
  0x22   :  { %245 = vmatpush.xpose.msk.msra.mxu3 %vm65_vm0, %v32_v8  ;;  %244 = vmatpush.xpose.msk.msra.mxu2 %vm65_vm0, %v32_v8 }
  0x23   :  { %215 = vmatpush.xpose.msk.msra.mxu0 %vm65_vm0, %v32_v8 }
  0x26   :  { %247 = vmatpush.xpose.msk.msra.mxu3 %vm65_vm0, %v31_v9  ;;  %246 = vmatpush.xpose.msk.msra.mxu2 %vm65_vm0, %v31_v9 }
  0x27   :  { %216 = vmatpush.xpose.msk.msra.mxu0 %vm65_vm0, %v31_v9 }
  0x2a   :  { %249 = vmatpush.xpose.msk.msra.mxu3 %vm65_vm0, %v30_v11  ;;  %248 = vmatpush.xpose.msk.msra.mxu2 %vm65_vm0, %v30_v11 }
  0x2b   :  { %217 = vmatpush.xpose.msk.msra.mxu0 %vm65_vm0, %v30_v11 }
  0x2e   :  { %251 = vmatpush.xpose.msk.msra.mxu3 %vm65_vm0, %v29_v14  ;;  %250 = vmatpush.xpose.msk.msra.mxu2 %vm65_vm0, %v29_v14 }
  0x2f   :  { %218 = vmatpush.xpose.msk.msra.mxu0 %vm65_vm0, %v29_v14 }
  0x32   :  { %253 = vmatpush.xpose.msk.msra.mxu3 %vm65_vm0, %v28_v15  ;;  %252 = vmatpush.xpose.msk.msra.mxu2 %vm65_vm0, %v28_v15 }
  0x33   :  { %219 = vmatpush.xpose.msk.msra.mxu0 %vm65_vm0, %v28_v15 }
  0x36   :  { %255 = vmatpush.xpose.msk.msra.mxu3 %vm65_vm0, %v27_v18  ;;  %254 = vmatpush.xpose.msk.msra.mxu2 %vm65_vm0, %v27_v18 }
  0x37   :  { %220 = vmatpush.xpose.msk.msra.mxu0 %vm65_vm0, %v27_v18 }
  0x3a   :  { %257 = vmatpush.xpose.msk.msra.mxu3 %vm65_vm0, %v26_v19  ;;  %256 = vmatpush.xpose.msk.msra.mxu2 %vm65_vm0, %v26_v19 }
  0x3b   :  { %221 = vmatpush.xpose.msk.msra.mxu0 %vm65_vm0, %v26_v19 }
  0x3e   :  { %259 = vmatpush.xpose.msk.msra.mxu3 %vm65_vm0, %v25_v20  ;;  %258 = vmatpush.xpose.msk.msra.mxu2 %vm65_vm0, %v25_v20 }
  0x3f   :  { %222 = vmatpush.xpose.msk.msra.mxu0 %vm65_vm0, %v25_v20 }
  0x41   :  { %225 = vmatmul.msk.f32.vlgmr.msra.gmra.mxu3 %vm65_vm0, %v23_v21  ;;  %224 = vmatmul.msk.f32.vlgmr.msra.gmra.mxu2 %vm65_vm0, %v22_v22 }
  0x42   :  { %223 = vmatmul.msk.f32.vlgmr.msra.gmra.mxu0 %vm65_vm0, %v21_v23 }
  0x49   :  { %226 = vmatmul.msk.f32.gmra.mxu3 %vm65_vm0, %v24_v24 }
  0x67   :  { %v164_v43 = vpop.permute.xlu2 %163 }
  0x7a   :  { %v63_v26 = vpop.permute.xlu0 %62 }
  0x7b   :  { %v53_v27 = vpop.permute.xlu1 %52 }
  0x82   :  { %v58_v29 = vpop.permute.xlu0 %57 }
  0x83   :  { %v48_v34 = vpop.permute.xlu1 %47 }
  0xbf   :  { %v143_v35 = vpop.f32.mrf.mxu0 }
  0xc0   :  { %v144_v39 = vadd.f32 %v143_v35, %v48_v34 }
  0xc2   :  { %v155_v41 = vmax.f32 %v144_v39, 0.0 }
  0xc4   :  { %v149_v28 = vpop.f32.mrf.mxu3  ;;  %v146_v30 = vpop.f32.mrf.mxu2 }
  0xc5   :  { %v150_v32 = vadd.f32 %v149_v28, %v58_v29  ;;  %v147_v36 = vadd.f32 %v146_v30, %v53_v27 }
  0xc7   :  { %v157_v38 = vmax.f32 %v150_v32, 0.0  ;;  %v156_v40 = vmax.f32 %v147_v36, 0.0 }
  0xcc   :  { %v152_v31 = vpop.f32.mrf.mxu3 }
  0xcd   :  { %v153_v33 = vadd.f32 %v152_v31, %v63_v26 }
  0xcf   :  { %v158_v37 = vmax.f32 %v153_v33, 0.0 }
  0xd1   :  { %182 = vmatpush.msra.mxu1 %v158_v37 }
  0xd3   :  { %183 = vmatpush.msra.mxu1 %v157_v38 }
  0xd5   :  { %184 = vmatpush.msra.mxu1 %v156_v40 }
  0xd7   :  { %185 = vmatpush.msra.mxu1 %v155_v41 }
  0xd8   :  { %227 = vmatmul.msk.f32.vlgmr.msra.gmra.mxu1 %vm166_vm1, %v159_v42 }
 0x155   :  { %v187_v44 = vpop.f32.mrf.mxu1 }
 0x156   :  { %v188_v45 = vadd.f32 %v187_v44, %v164_v43 }
 0x158   :  { %190 = vst [vmem:[#allocation2] sm:$0xff] %v188_v45 }
 0x159   :  { %201 = dma.vmem_to_hbm [thread:$0]  %s197_s17, 128, %s199_s20, [#allocation3]  }
 0x15a   :  { %289 = dma.done.wait [#allocation3], 128  }
 0x15b   :  { %290 = vsyncadd [#allocation3], 4294967168 }
 0x15c   :  { %206 = vsyncpa [#allocation3], 1 }

</bundles_post_ra>
